<compile_context>
chip_gen: v7x
topology: tpu7x:2x2x1
jax: 0.10.0
libtpu: 0.0.40
codegen_flags: <defaults>
</compile_context>

<pallas_src>
import functools
import numpy as np
import jax
import jax.numpy as jnp
from jax import lax
from jax.experimental import pallas as pl
from jax.experimental.pallas import tpu as pltpu

F_PAD = 128   # lane-dense feature-slab width carried through the whole model


# --------------------------------------------------------------------------
# Kernel 1: fused per-sentence path.  One grid step per sentence ("parallel"),
# everything stays resident in VMEM:
#   encoder projection + bias + tanh           (stand-in for plm_model)
#   subword->word pooling  input_mask^T @ h    (dot_general, no XLU transpose)
#   mention-mask normalize + mention matmul    (word_masks = eye[1:-1] folded
#                                               into slicing enc_hidden[1:-1])
#   CLS concat + zero pad to a 128-lane slab   (lane-dense output store)
# --------------------------------------------------------------------------
def _sentence_kernel(emb_ref, imask_ref, mmask_ref, wenc_ref, benc_ref, o_ref,
                     *, concat_cls):
    emb = emb_ref[0]                                          # (seq, H)
    # Stand-in encoder: bf16 MXU inputs, f32 accumulation.  (The weights are a
    # deterministic substitute for the external BERT checkpoint, so the bf16
    # cast is numerically inconsequential here.)
    proj = jnp.dot(emb.astype(jnp.bfloat16),
                   wenc_ref[...].astype(jnp.bfloat16),
                   preferred_element_type=jnp.float32)
    hidden = jnp.tanh(proj + benc_ref[...])                   # (seq, H)

    # encoder_hidden_state = input_mask.T @ last_hidden_state, expressed by
    # contracting dim 0 of both operands so no explicit transpose is built.
    imask = imask_ref[0]                                      # (seq, W)
    enc_hidden = lax.dot_general(
        imask, hidden, dimension_numbers=(((0,), (0,)), ((), ())),
        preferred_element_type=jnp.float32)                   # (W, H)

    # Fused: mask_sum -> 1/mask_sum (EUP approx reciprocal) -> normalized mask
    # @ interior-word hidden states.  Pad mention rows (all-zero) are guarded.
    mm = mmask_ref[0]                                         # (M_pad, W-2)
    msum = jnp.sum(mm, axis=1, keepdims=True)                 # (M_pad, 1)
    inv = jnp.where(msum > 0.0,
                    pl.reciprocal(jnp.maximum(msum, 1e-30), approx=True),
                    0.0)
    feat = jnp.dot(mm * inv, enc_hidden[1:-1, :],
                   preferred_element_type=jnp.float32)        # (M_pad, H)

    m_pad, h = feat.shape
    pieces = [feat]
    if concat_cls:
        cls = jnp.broadcast_to(enc_hidden[0:1, :], (m_pad, h))
        cls = jnp.where(msum > 0.0, cls, 0.0)                 # keep pad rows zero
        pieces.append(cls)
    used = sum(p.shape[1] for p in pieces)
    if F_PAD > used:
        pieces.append(jnp.zeros((m_pad, F_PAD - used), jnp.float32))
    full = pieces[0] if len(pieces) == 1 else jnp.concatenate(pieces, axis=1)
    o_ref[0] = full                                           # (M_pad, 128)


def pallas_sentence_features(emb, imask, mmask, w_enc, b_enc, *, concat_cls):
    s, seq, h = emb.shape
    w = imask.shape[2]
    m_pad = mmask.shape[1]
    kernel = functools.partial(_sentence_kernel, concat_cls=concat_cls)
    return pl.pallas_call(
        kernel,
        grid=(s,),
        out_shape=jax.ShapeDtypeStruct((s, m_pad, F_PAD), jnp.float32),
        in_specs=[
            pl.BlockSpec((1, seq, h), lambda i: (i, 0, 0)),
            pl.BlockSpec((1, seq, w), lambda i: (i, 0, 0)),
            pl.BlockSpec((1, m_pad, w - 2), lambda i: (i, 0, 0)),
            pl.BlockSpec((h, h), lambda i: (0, 0)),
            pl.BlockSpec((1, h), lambda i: (0, 0)),
        ],
        out_specs=pl.BlockSpec((1, m_pad, F_PAD), lambda i: (i, 0, 0)),
        compiler_params=pltpu.CompilerParams(
            dimension_semantics=("parallel",)),
    )(emb, imask, mmask, w_enc, b_enc)


# --------------------------------------------------------------------------
# Kernel 2: both GSL (GCN) layers fused into one body.
#   out = adj @ relu(adj @ (x @ w1)) @ w2
# Weights are pre-padded to lane-dense (128, 128) slabs so every matmul and
# the output store are full-lane; dropout is identity in eval mode.
# --------------------------------------------------------------------------
def _gcn_fused_kernel(adj_ref, x_ref, w1_ref, w2_ref, o_ref):
    adj = adj_ref[...]
    s1 = jnp.dot(x_ref[...], w1_ref[...], preferred_element_type=jnp.float32)
    h1 = jnp.maximum(jnp.dot(adj, s1, preferred_element_type=jnp.float32), 0.0)
    s2 = jnp.dot(h1, w2_ref[...], preferred_element_type=jnp.float32)
    o_ref[...] = jnp.dot(adj, s2, preferred_element_type=jnp.float32)


def pallas_gcn_fused(adj, x, w1p, w2p):
    n = adj.shape[0]
    vmem = lambda: pl.BlockSpec(memory_space=pltpu.MemorySpace.VMEM)
    return pl.pallas_call(
        _gcn_fused_kernel,
        out_shape=jax.ShapeDtypeStruct((n, F_PAD), jnp.float32),
        in_specs=[vmem(), vmem(), vmem(), vmem()],
        out_specs=vmem(),
    )(adj, x, w1p, w2p)


# --------------------------------------------------------------------------
# Single jitted device graph: embedding gather (glue) -> fused sentence kernel
# -> real-row gather -> fused 2-layer GCN kernel.
# --------------------------------------------------------------------------
@functools.partial(jax.jit, static_argnames=("concat_cls",))
def _device_forward(embed, w_enc, b_enc, w1p, w2p,
                    ids, input_masks, mention_masks,
                    sent_idx, row_idx, adj_pad, *, concat_cls):
    emb = embed[ids]                                          # (S, seq, H) gather glue
    feats = pallas_sentence_features(emb, input_masks, mention_masks,
                                     w_enc, b_enc, concat_cls=concat_cls)
    x = feats[sent_idx, row_idx]                              # (n_pad, 128)
    return pallas_gcn_fused(adj_pad, x, w1p, w2p)             # (n_pad, 128)


# --------------------------------------------------------------------------
# Host-side glue replicating ECRModel.forward semantics
# --------------------------------------------------------------------------
def expand_win(numbers, mask, win_len, win_w):
    # Faithful port of ECRModel.expand_win (pure Python / numpy data prep).
    max_count, count, l, max_l, max_r = 0, 0, numbers[0], numbers[0], numbers[-1]
    nums = [numbers[0] - 1] + list(numbers) + [numbers[-1] + 2]
    for i in range(1, len(nums) - 1):
        if nums[i] - nums[i - 1] > 1:
            if count > max_count:
                max_count = count
                max_l = l
                max_r = nums[i - 1]
            l = nums[i]
            count = 1
        else:
            count += 1
    expand = mask.copy()
    expand[:, max(max_l - win_len, 0):max_l] = win_w
    expand[:, max_r + 1:min(max_r + 1 + win_len, mask.shape[-1])] = win_w
    return np.where(mask > 0, mask, expand)


class ECRModelPallas:
    """JAX/Pallas re-implementation of ECRModel.forward (eval mode)."""

    def __init__(self, key, *, vocab=100, hidden=32, hidden1=32, hidden2=16,
                 win_w=0.5, win_len=1, concat_cls=True):
        self.win_w = win_w
        self.win_len = win_len
        self.concat_cls = concat_cls
        self.hidden2 = hidden2
        feat_dim = 2 * hidden if concat_cls else hidden
        assert feat_dim <= F_PAD and hidden1 <= F_PAD and hidden2 <= F_PAD

        k1, k2, k3, k4 = jax.random.split(key, 4)
        # TODO(synk): the real plm_model (BERT) is an external checkpoint; it is
        # substituted by a deterministic embedding + dense + tanh stand-in.
        self.embed = (jax.random.normal(k1, (vocab, hidden)) * 0.02).astype(jnp.float32)
        self.w_enc = (jax.random.normal(k2, (hidden, hidden)) * 0.1).astype(jnp.float32)
        self.b_enc = jnp.zeros((1, hidden), jnp.float32)
        # TODO(synk): self.gsl is looked up dynamically (getattr(gsls, ...));
        # implemented as a canonical 2-layer GCN with dropout disabled (eval).
        w1 = (jax.random.normal(k3, (feat_dim, hidden1)) * 0.1).astype(jnp.float32)
        w2 = (jax.random.normal(k4, (hidden1, hidden2)) * 0.1).astype(jnp.float32)
        # Pre-pad GCN weights once to lane-dense 128x128 slabs (zero pads keep
        # the math identical to the unpadded matmuls).
        self.w1p = jnp.zeros((F_PAD, F_PAD), jnp.float32).at[:feat_dim, :hidden1].set(w1)
        self.w2p = jnp.zeros((F_PAD, F_PAD), jnp.float32).at[:hidden1, :hidden2].set(w2)
        # loss_type-dependent parameters W / H are unused in forward() -> omitted.

    def forward(self, dataset, adj):
        # ---- host-side batching: one H2D transfer per array, not per sentence
        ids = np.stack([np.asarray(s['input_ids'], np.int32) for s in dataset])
        imasks = np.stack([np.asarray(s['input_mask'], np.float32) for s in dataset])
        n_words = imasks.shape[2]

        per_sent_rows, counts = [], []
        for sent in dataset:
            rows = []
            for mention in list(sent['output_event']) + list(sent['output_entity']):
                mm = np.zeros((1, n_words - 2), np.float32)
                mm[:, mention['tokens_number']] = 1.0
                if self.win_len > 0 and self.win_w > 0:
                    mm = expand_win(mention['tokens_number'], mm,
                                    self.win_len, self.win_w)
                rows.append(mm)
            per_sent_rows.append(np.concatenate(rows, axis=0))
            counts.append(len(rows))

        m_pad = int(-(-max(counts) // 8) * 8)                 # sublane-align mentions
        mmask = np.zeros((len(dataset), m_pad, n_words - 2), np.float32)
        for i, rows in enumerate(per_sent_rows):
            mmask[i, :rows.shape[0]] = rows

        # gather indices of the real mention rows (node order = sentence order,
        # events then entities within a sentence, matching the reference concat)
        sent_idx = np.concatenate([np.full(c, i, np.int32)
                                   for i, c in enumerate(counts)])
        row_idx = np.concatenate([np.arange(c, dtype=np.int32) for c in counts])
        n_nodes = int(sent_idx.shape[0])
        n_pad = int(-(-n_nodes // 8) * 8)

        adj_np = np.asarray(adj, np.float32)
        adj_pad = np.zeros((n_pad, n_pad), np.float32)
        adj_pad[:n_nodes, :n_nodes] = adj_np
        sent_idx_p = np.zeros((n_pad,), np.int32); sent_idx_p[:n_nodes] = sent_idx
        row_idx_p = np.zeros((n_pad,), np.int32); row_idx_p[:n_nodes] = row_idx
        # (pad nodes have all-zero adjacency rows/cols, so whatever feature the
        #  pad gather indices point at cannot leak into the real outputs)

        out_pad = _device_forward(self.embed, self.w_enc, self.b_enc,
                                  self.w1p, self.w2p,
                                  jnp.asarray(ids), jnp.asarray(imasks),
                                  jnp.asarray(mmask),
                                  jnp.asarray(sent_idx_p), jnp.asarray(row_idx_p),
                                  jnp.asarray(adj_pad),
                                  concat_cls=self.concat_cls)
        return out_pad[:n_nodes, :self.hidden2]


# --------------------------------------------------------------------------
# main
# --------------------------------------------------------------------------
def _make_input_mask(seq_len, n_words):
    # deterministic subword->word averaging alignment (CLS=word0, SEP=last word)
    mask = np.zeros((seq_len, n_words), dtype=np.float32)
    mask[0, 0] = 1.0
    mask[seq_len - 1, n_words - 1] = 1.0
    interior_tokens = list(range(1, seq_len - 1))       # 14 subword tokens
    interior_words = list(range(1, n_words - 1))        # 8 words
    assign = []
    for w in interior_words[:6]:
        assign += [w, w]                                # words 1..6: 2 subwords
    for w in interior_words[6:]:
        assign += [w]                                   # words 7..8: 1 subword
    counts = np.bincount(assign, minlength=n_words).astype(np.float32)
    for t, w in zip(interior_tokens, assign):
        mask[t, w] = 1.0 / counts[w]
    return mask


def _make_adj(n_nodes):
    a = np.eye(n_nodes, dtype=np.float32)
    for i in range(n_nodes):
        a[i, (i + 1) % n_nodes] = 1.0
        a[(i + 1) % n_nodes, i] = 1.0
    d = a.sum(axis=1)
    d_inv_sqrt = 1.0 / np.sqrt(d)
    return (a * d_inv_sqrt[:, None] * d_inv_sqrt[None, :]).astype(np.float32)


if __name__ == "__main__":
    key = jax.random.PRNGKey(0)
    k_model, k_ids = jax.random.split(key)

    seq_len, n_words, vocab = 16, 10, 100
    ids = jax.random.randint(k_ids, (2, seq_len), 0, vocab, dtype=jnp.int32)
    input_mask = _make_input_mask(seq_len, n_words)

    dataset = [
        {
            'input_ids': np.asarray(ids[0]),
            'input_mask': input_mask,
            'output_event': [{'tokens_number': [1, 2]}, {'tokens_number': [4]}],
            'output_entity': [{'tokens_number': [0]}, {'tokens_number': [6, 7]}],
        },
        {
            'input_ids': np.asarray(ids[1]),
            'input_mask': input_mask,
            'output_event': [{'tokens_number': [0, 1]}, {'tokens_number': [5]}],
            'output_entity': [{'tokens_number': [3]}, {'tokens_number': [6]}],
        },
    ]
    n_nodes = sum(len(s['output_event']) + len(s['output_entity']) for s in dataset)
    adj = jnp.asarray(_make_adj(n_nodes))

    model = ECRModelPallas(k_model, vocab=vocab, hidden=32, hidden1=32, hidden2=16,
                           win_w=0.5, win_len=1, concat_cls=True)
    out = model.forward(dataset, adj)
    out = jax.block_until_ready(out)
    assert out.shape == (n_nodes, 16) and bool(jnp.all(jnp.isfinite(out)))
    print("KERNEL_OK")
</pallas_src>

<mosaic_0001>
module attributes {stable_mosaic.version = 11 : i64} {
  func.func @_sentence_kernel(%arg0: i32, %arg1: memref<1x16x32xf32, #tpu.memory_space<vmem>>, %arg2: memref<1x16x10xf32, #tpu.memory_space<vmem>>, %arg3: memref<1x8x8xf32, #tpu.memory_space<vmem>>, %arg4: memref<32x32xf32, #tpu.memory_space<vmem>>, %arg5: memref<1x32xf32, #tpu.memory_space<vmem>>, %arg6: memref<1x8x128xf32, #tpu.memory_space<vmem>>) attributes {dimension_semantics = [#tpu.dimension_semantics<parallel>], iteration_bounds = array<i64: 2>, scalar_prefetch = 0 : i64, scratch_operands = 0 : i64, tpu.core_type = #tpu.core_type<tc>, window_params = [{transform_indices = @transform_0, window_bounds = array<i64: 1, 16, 32>}, {transform_indices = @transform_1, window_bounds = array<i64: 1, 16, 10>}, {transform_indices = @transform_2, window_bounds = array<i64: 1, 8, 8>}, {pipeline_mode = #tpu.pipeline_mode<synchronous>, transform_indices = @transform_3, window_bounds = array<i64: 32, 32>}, {pipeline_mode = #tpu.pipeline_mode<synchronous>, transform_indices = @transform_4, window_bounds = array<i64: 1, 32>}, {transform_indices = @transform_5, window_bounds = array<i64: 1, 8, 128>}]} {
    %c0 = arith.constant 0 : index
    %c0_0 = arith.constant 0 : index
    %c0_1 = arith.constant 0 : index
    %0 = vector.load %arg1[%c0, %c0_0, %c0_1] : memref<1x16x32xf32, #tpu.memory_space<vmem>>, vector<1x16x32xf32>
    %1 = vector.shape_cast %0 : vector<1x16x32xf32> to vector<16x32xf32>
    %2 = arith.truncf %1 : vector<16x32xf32> to vector<16x32xbf16>
    %c0_2 = arith.constant 0 : index
    %c0_3 = arith.constant 0 : index
    %3 = vector.load %arg4[%c0_2, %c0_3] : memref<32x32xf32, #tpu.memory_space<vmem>>, vector<32x32xf32>
    %4 = arith.truncf %3 : vector<32x32xf32> to vector<32x32xbf16>
    %cst = arith.constant dense<0.000000e+00> : vector<16x32xf32>
    %5 = tpu.matmul %2, %4, %cst {dimension_numbers = #tpu.dot_dimension_numbers<[1], [0], [0], [1], [0, 0, 1, 1], [], []>} : vector<16x32xbf16>, vector<32x32xbf16>, vector<16x32xf32> -> vector<16x32xf32>
    %c0_4 = arith.constant 0 : index
    %c0_5 = arith.constant 0 : index
    %6 = vector.load %arg5[%c0_4, %c0_5] : memref<1x32xf32, #tpu.memory_space<vmem>>, vector<1x32xf32>
    %7 = vector.broadcast %6 : vector<1x32xf32> to vector<16x32xf32>
    %8 = arith.addf %5, %7 : vector<16x32xf32>
    %9 = math.tanh %8 : vector<16x32xf32>
    %c0_6 = arith.constant 0 : index
    %c0_7 = arith.constant 0 : index
    %c0_8 = arith.constant 0 : index
    %10 = vector.load %arg2[%c0_6, %c0_7, %c0_8] : memref<1x16x10xf32, #tpu.memory_space<vmem>>, vector<1x16x10xf32>
    %11 = vector.shape_cast %10 : vector<1x16x10xf32> to vector<16x10xf32>
    %cst_9 = arith.constant dense<0.000000e+00> : vector<10x32xf32>
    %12 = tpu.matmul %11, %9, %cst_9 {dimension_numbers = #tpu.dot_dimension_numbers<[0], [0], [1], [1], [0, 1, 1, 1], [], []>} : vector<16x10xf32>, vector<16x32xf32>, vector<10x32xf32> -> vector<10x32xf32>
    %c0_10 = arith.constant 0 : index
    %c0_11 = arith.constant 0 : index
    %c0_12 = arith.constant 0 : index
    %13 = vector.load %arg3[%c0_10, %c0_11, %c0_12] : memref<1x8x8xf32, #tpu.memory_space<vmem>>, vector<1x8x8xf32>
    %14 = vector.shape_cast %13 : vector<1x8x8xf32> to vector<8x8xf32>
    %cst_13 = arith.constant dense<0.000000e+00> : vector<8xf32>
    %15 = vector.multi_reduction <add>, %14, %cst_13 [1] : vector<8x8xf32> to vector<8xf32>
    %16 = vector.shape_cast %15 : vector<8xf32> to vector<8x1xf32>
    %cst_14 = arith.constant 0.000000e+00 : f32
    %17 = vector.broadcast %cst_14 : f32 to vector<8x1xf32>
    %18 = arith.cmpf ogt, %16, %17 : vector<8x1xf32>
    %cst_15 = arith.constant 1.000000e-30 : f32
    %19 = vector.broadcast %cst_15 : f32 to vector<8x1xf32>
    %20 = arith.maximumf %16, %19 : vector<8x1xf32>
    %21 = tpu.reciprocal %20 {approx = true} : vector<8x1xf32> -> vector<8x1xf32>
    %cst_16 = arith.constant 0.000000e+00 : f32
    %22 = vector.broadcast %cst_16 : f32 to vector<8x1xf32>
    %23 = arith.select %18, %21, %22 : vector<8x1xi1>, vector<8x1xf32>
    %24 = vector.broadcast %23 : vector<8x1xf32> to vector<8x8xf32>
    %25 = arith.mulf %14, %24 : vector<8x8xf32>
    %26 = vector.extract_strided_slice %12 {offsets = [1, 0], sizes = [8, 32], strides = [1, 1]} : vector<10x32xf32> to vector<8x32xf32>
    %cst_17 = arith.constant dense<0.000000e+00> : vector<8x32xf32>
    %27 = tpu.matmul %25, %26, %cst_17 {dimension_numbers = #tpu.dot_dimension_numbers<[1], [0], [0], [1], [0, 0, 1, 1], [], []>} : vector<8x8xf32>, vector<8x32xf32>, vector<8x32xf32> -> vector<8x32xf32>
    %28 = vector.extract_strided_slice %12 {offsets = [0, 0], sizes = [1, 32], strides = [1, 1]} : vector<10x32xf32> to vector<1x32xf32>
    %29 = vector.shape_cast %28 : vector<1x32xf32> to vector<1x32xf32>
    %30 = vector.broadcast %29 : vector<1x32xf32> to vector<8x32xf32>
    %cst_18 = arith.constant 0.000000e+00 : f32
    %31 = vector.broadcast %cst_18 : f32 to vector<8x1xf32>
    %32 = arith.cmpf ogt, %16, %31 : vector<8x1xf32>
    %cst_19 = arith.constant 0.000000e+00 : f32
    %33 = vector.shape_cast %32 : vector<8x1xi1> to vector<8x1xi1>
    %34 = vector.broadcast %33 : vector<8x1xi1> to vector<8x32xi1>
    %35 = vector.broadcast %cst_19 : f32 to vector<8x32xf32>
    %36 = arith.select %34, %30, %35 : vector<8x32xi1>, vector<8x32xf32>
    %cst_20 = arith.constant 0.000000e+00 : f32
    %37 = vector.broadcast %cst_20 : f32 to vector<8x64xf32>
    %38 = tpu.concatenate %27, %36, %37 in 1 : vector<8x32xf32>, vector<8x32xf32>, vector<8x64xf32> -> vector<8x128xf32>
    %c0_21 = arith.constant 0 : index
    %c0_22 = arith.constant 0 : index
    %c0_23 = arith.constant 0 : index
    %39 = vector.load %arg6[%c0_21, %c0_22, %c0_23] : memref<1x8x128xf32, #tpu.memory_space<vmem>>, vector<1x8x128xf32>
    %40 = vector.shape_cast %39 : vector<1x8x128xf32> to vector<8x128xf32>
    %41 = vector.shape_cast %38 : vector<8x128xf32> to vector<1x8x128xf32>
    tpu.vector_store %arg6[%c0_21, %c0_22, %c0_23], %41 {strides = array<i32>} : memref<1x8x128xf32, #tpu.memory_space<vmem>>, vector<1x8x128xf32>,
    return
  }
  func.func @transform_0(%arg0: i32) -> (i32, i32, i32) {
    %c0_i32 = arith.constant 0 : i32
    %c0_i32_0 = arith.constant 0 : i32
    %c0_i32_1 = arith.constant 0 : i32
    return %arg0, %c0_i32, %c0_i32_0 : i32, i32, i32
  }
  func.func @transform_1(%arg0: i32) -> (i32, i32, i32) {
    %c0_i32 = arith.constant 0 : i32
    %c0_i32_0 = arith.constant 0 : i32
    %c0_i32_1 = arith.constant 0 : i32
    return %arg0, %c0_i32, %c0_i32_0 : i32, i32, i32
  }
  func.func @transform_2(%arg0: i32) -> (i32, i32, i32) {
    %c0_i32 = arith.constant 0 : i32
    %c0_i32_0 = arith.constant 0 : i32
    %c0_i32_1 = arith.constant 0 : i32
    return %arg0, %c0_i32, %c0_i32_0 : i32, i32, i32
  }
  func.func @transform_3(%arg0: i32) -> (i32, i32) {
    %c0_i32 = arith.constant 0 : i32
    %c0_i32_0 = arith.constant 0 : i32
    %c0_i32_1 = arith.constant 0 : i32
    return %c0_i32, %c0_i32_0 : i32, i32
  }
  func.func @transform_4(%arg0: i32) -> (i32, i32) {
    %c0_i32 = arith.constant 0 : i32
    %c0_i32_0 = arith.constant 0 : i32
    %c0_i32_1 = arith.constant 0 : i32
    return %c0_i32, %c0_i32_0 : i32, i32
  }
  func.func @transform_5(%arg0: i32) -> (i32, i32, i32) {
    %c0_i32 = arith.constant 0 : i32
    %c0_i32_0 = arith.constant 0 : i32
    %c0_i32_1 = arith.constant 0 : i32
    return %arg0, %c0_i32, %c0_i32_0 : i32, i32, i32
  }
}

module attributes {stable_mosaic.version = 11 : i64} {
  func.func @_gcn_fused_kernel(%arg0: memref<8x8xf32, #tpu.memory_space<vmem>>, %arg1: memref<8x128xf32, #tpu.memory_space<vmem>>, %arg2: memref<128x128xf32, #tpu.memory_space<vmem>>, %arg3: memref<128x128xf32, #tpu.memory_space<vmem>>, %arg4: memref<8x128xf32, #tpu.memory_space<vmem>>) attributes {dimension_semantics = [], scalar_prefetch = 0 : i64, scratch_operands = 0 : i64, tpu.core_type = #tpu.core_type<tc>} {
    %c0 = arith.constant 0 : index
    %c0_0 = arith.constant 0 : index
    %0 = vector.load %arg0[%c0, %c0_0] : memref<8x8xf32, #tpu.memory_space<vmem>>, vector<8x8xf32>
    %c0_1 = arith.constant 0 : index
    %c0_2 = arith.constant 0 : index
    %1 = vector.load %arg1[%c0_1, %c0_2] : memref<8x128xf32, #tpu.memory_space<vmem>>, vector<8x128xf32>
    %c0_3 = arith.constant 0 : index
    %c0_4 = arith.constant 0 : index
    %2 = vector.load %arg2[%c0_3, %c0_4] : memref<128x128xf32, #tpu.memory_space<vmem>>, vector<128x128xf32>
    %cst = arith.constant dense<0.000000e+00> : vector<8x128xf32>
    %3 = tpu.matmul %1, %2, %cst {dimension_numbers = #tpu.dot_dimension_numbers<[1], [0], [0], [1], [0, 0, 1, 1], [], []>} : vector<8x128xf32>, vector<128x128xf32>, vector<8x128xf32> -> vector<8x128xf32>
    %cst_5 = arith.constant dense<0.000000e+00> : vector<8x128xf32>
    %4 = tpu.matmul %0, %3, %cst_5 {dimension_numbers = #tpu.dot_dimension_numbers<[1], [0], [0], [1], [0, 0, 1, 1], [], []>} : vector<8x8xf32>, vector<8x128xf32>, vector<8x128xf32> -> vector<8x128xf32>
    %cst_6 = arith.constant 0.000000e+00 : f32
    %5 = vector.broadcast %cst_6 : f32 to vector<8x128xf32>
    %6 = arith.maximumf %4, %5 : vector<8x128xf32>
    %c0_7 = arith.constant 0 : index
    %c0_8 = arith.constant 0 : index
    %7 = vector.load %arg3[%c0_7, %c0_8] : memref<128x128xf32, #tpu.memory_space<vmem>>, vector<128x128xf32>
    %cst_9 = arith.constant dense<0.000000e+00> : vector<8x128xf32>
    %8 = tpu.matmul %6, %7, %cst_9 {dimension_numbers = #tpu.dot_dimension_numbers<[1], [0], [0], [1], [0, 0, 1, 1], [], []>} : vector<8x128xf32>, vector<128x128xf32>, vector<8x128xf32> -> vector<8x128xf32>
    %cst_10 = arith.constant dense<0.000000e+00> : vector<8x128xf32>
    %9 = tpu.matmul %0, %8, %cst_10 {dimension_numbers = #tpu.dot_dimension_numbers<[1], [0], [0], [1], [0, 0, 1, 1], [], []>} : vector<8x8xf32>, vector<8x128xf32>, vector<8x128xf32> -> vector<8x128xf32>
    %c0_11 = arith.constant 0 : index
    %c0_12 = arith.constant 0 : index
    %10 = vector.load %arg4[%c0_11, %c0_12] : memref<8x128xf32, #tpu.memory_space<vmem>>, vector<8x128xf32>
    tpu.vector_store %arg4[%c0_11, %c0_12], %9 {strides = array<i32>} : memref<8x128xf32, #tpu.memory_space<vmem>>, vector<8x128xf32>,
    return
  }
}

</mosaic_0001>

<bundles_post_ra>
// kernel: _device_forward.2
= control target key start
LH: loop header
LB: loop body
LE: loop exit
PB: predicated region body
PF: predicated region fallthrough
CT: control target
= control target key end

     0   :  { %s733_s18 = smov 0   ;;  %s787_s0 = inlined_call_operand.vmem [shape: f32[2,16,32], index: 0, kind: input, shape index: {}]   ;;  %s788_s1 = inlined_call_operand.vmem [shape: f32[2,16,10], index: 1, kind: input, shape index: {}]   ;;  %s789_s2 = inlined_call_operand.vmem [shape: f32[2,8,8], index: 2, kind: input, shape index: {}]   ;;  %s790_s3 = inlined_call_operand.vmem [shape: f32[32,32], index: 3, kind: input, shape index: {}]   ;;  %s791_s4 = inlined_call_operand.vmem [shape: f32[1,32], index: 4, kind: input, shape index: {}]   ;;  %s792_s5 = inlined_call_operand.vmem [shape: f32[2,8,128], index: 5, kind: output, shape index: {}]  }
   0x1 LB: > { %s622_s19 = sadd.s32 4294967295, %s698_s18   ;;  %p626_p0 = scmp.ge.s32.totalorder %s698_s18, 1  ;;  %s698_s18 = sphi %s733_s18, %s15_s18  }
   0x2   : > { %p206_p1 = scmp.lt.s32.totalorder %s698_s18, 3 }
   0x4   : > { %p207_p2 = pnand %p626_p0, %p206_p1 }
   0x5   : > { %v264_v0 = vld [vmem:[%s790_s3] sm:$0xff] (!%p207_p2)  ;;  %v265_v1 = vld [vmem:[%s790_s3 + $0x8] sm:$0xff] (!%p207_p2)  ;;  %v266_v2 = vld [vmem:[%s790_s3 + $0x10] sm:$0xff] (!%p207_p2)  ;;  %p242_p3 = scmp.lt.s32.totalorder (!%p207_p2), %s622_s19, 1  ;;  %v700_v3 = vmov (!%p207_p2), 0.0   ;;  %vm701_vm0 = vmmov (!%p207_p2), 0   ;;  %v530_v28 = vlaneseq (!%p207_p2) }
   0x6   : > { %210 = sbr.rel (%p207_p2) target bundleno = 684 (0x2ac), region = 40  ;;  %651 = vmatprep.subr.bf16.mxu0 (!%p207_p2), %v700_v3  ;;  %v268_v4 = vpack.c.bf16 (!%p207_p2), %v265_v1, %v264_v0  ;;  %v267_v5 = vld [vmem:[%s790_s3 + $0x18] sm:$0xff] (!%p207_p2)  ;;  %655 = vmatprep.mubr.msk.bf16.mxu0 (!%p207_p2), %vm701_vm0, %v700_v3  ;;  %vm277_vm1 = vcmask (!%p207_p2), 261120   ;;  %vm441_vm2 = vcmask (!%p207_p2), 64512   ;;  %vm358_vm3 = vcmask (!%p207_p2), 130048   ;;  %s702_s16 = smov (!%p207_p2), 32  }
   0x7   : > { %v269_v6 = vpack.c.bf16 (!%p207_p2), %v267_v5, %v266_v2  ;;  %v633_v15 = vld [vmem:[%s791_s4] ss:$0 sm:$0xff] (!%p207_p2)  ;;  %v531_v29 = vshrl.u32 (!%p207_p2), %v530_v28, 7  ;;  %vm452_vm5 = vcmask (!%p207_p2), 1046528   ;;  %vm542_vm6 = vcmask (!%p207_p2), 523264  }
   0x8   : > { %652 = vmatpush3.bf16.msra.mxu0 (!%p207_p2), %v268_v4 }
   0x9   : > { %653 = vmatprep.subr.bf16.mxu0 (!%p207_p2), %v700_v3  ;;  %v532_v31 = vsub.s32 (!%p207_p2), 0, %v531_v29 }
   0xc   : > { %654 = vmatpush3.bf16.msra.mxu0 (!%p207_p2), %v269_v6 }
   0xd   : > { %s794_s19 = smov (!%p242_p3, %s622_s19), 1 }
   0xe   : > { %s640_s28 = sshll.u32 %s794_s19, 4  ;;  %s631_s10 = sshll.u32 %s794_s19, 3 }
   0xf   : > { %s246_s6 = scalar_lea.vmem %s787_s0, %s640_s28  ;;  %s251_s9 = scalar_lea.vmem %s788_s1, %s640_s28 }
  0x10   : > { %v261_v7 = vld [vmem:[%s246_s6] sm:$0xff]  ;;  %v262_v8 = vld [vmem:[%s246_s6 + $0x8] sm:$0xff]  ;;  %s255_s13 = scalar_lea.vmem %s789_s2, %s631_s10  ;;  %s259_s21 = scalar_lea.vmem %s792_s5, %s631_s10 }
  0x11   : > { %v324_v9 = vld [vmem:[%s251_s9] sm:$0xff]  ;;  %v263_v10 = vpack.c.bf16 %v262_v8, %v261_v7  ;;  %v325_v11 = vld [vmem:[%s251_s9 + $0x8] sm:$0xff] }
  0x12   : > { %326 = vxpose.xlu0.b32.start [1/2] (short) (narrow) %v324_v9, 16  ;;  %v440_v12 = vld [vmem:[%s255_s13] sm:$0xff] }
  0x13   : > { %656 = vmatmul.mubr.msk.bf16.vlgmr.msra.gmra.mrb[0].mxu0 %vm277_vm1, %v263_v10  ;;  %v442_v13 = vsel %vm441_vm2, %v440_v12, 0.0 }
  0x14   : > { %443 = vadd.xlane.f32.xlu1 %v442_v13 }
  0x16   : > { %327 = vxpose.xlu0.b32.end [2/2] (short) (narrow) %v325_v11, 16 }
  0x92   : > { %v342_v14 = vpop.trf.xlu0 }
  0x93   : > { %663 = vmatprep.mubr.msk.f32.mxu1 %vm358_vm3, %v342_v14 }
  0x96   : > { %v343_v25 = vpop.trf.xlu0 }
  0xa1   : > { %v444_v26 = vpop.xlane.xlu1 %443 }
  0xa2   : > { %v446_v27 = vmax.f32 %v444_v26, 1e-30  ;;  %vm445_vm4 = vcmp.gt.f32.partialorder %v444_v26, 0.0 }
  0xe6   : > { %v315_v16 = vpop.f32.mrb[0].mxu0 }
  0xe7   : > { %v316_v17 = vadd.f32 %v633_v15, %v315_v16  ;;  %v657_v18 = vpop.f32.mrb[1].mxu0 }
  0xe8   : > { %v318_v19 = vpop.f32.mrb[2].mxu0 }
  0xe9   : > { %v319_v20 = vadd.f32 %v633_v15, %v318_v19  ;;  %v658_v21 = vpop.f32.mrb[3].mxu0  ;;  %686 = vtanh.f32 %v316_v17 }
  0xeb   : > { %688 = vtanh.f32 %v319_v20 }
  0xec   : > { %690 = vrcp.f32 %v446_v27 }
  0xf3   : > { %v687_v22 = vpop.eup %686 }
  0xf5   : > { %v689_v23 = vpop.eup %688 }
  0xf6   : > { %v671_v24 = vpack.c.bf16 %v689_v23, %v687_v22  ;;  %v691_v30 = vpop.eup %690 }
  0xf7   : > { %v448_v33 = vsel %vm445_vm4, %v691_v30, 0.0 }
  0xf8   : > { %672 = vmatprep.subr.bf16.mxu1 %v671_v24  ;;  %v449_v38 = vmul.f32 %v448_v33, %v440_v12 }
  0xf9   : > { %674 = vmatpush3.bf16.msra.mxu1 %v671_v24 }
  0xfa   : > { %666 = vmatprep.subr.mxu1 %v700_v3 }
  0xfc   : > { %664 = vmatmul.mubr.msk.f32.vlgmr.msra.gmra.mrb[0].mxu1 %vm358_vm3, %v343_v25 }
  0xfd   : > { %668 = vmatprep.mubr.msk.f32.mxu1 %vm701_vm0, %v700_v3 }
 0x1cf   : > { %v665_v32 = vpop.f32.mrb[0].mxu1 }
 0x1d0   : > { %v454_v34 = vrot.slane %v665_v32, 1  ;;  %v431_v35 = vpop.f32.mrb[1].mxu1 }
 0x1d1   : > { %v453_v36 = vrot.slane %v431_v35, 1  ;;  %v533_v37 = vrot.slane %v431_v35, %v532_v31 }
 0x1d3   : > { %v536_v39 = vsel %vm445_vm4, %v533_v37, 0.0  ;;  %v455_v40 = vsel %vm452_vm5, %v453_v36, %v454_v34 }
 0x1d4   : > { %538 = vrot.lane.b32.xlu1 %v536_v39, %s702_s16  ;;  %667 = vmatpush3.msra.mxu1 %v455_v40 }
 0x1d5   : > { %669 = vmatmul.mubr.msk.f32.vlgmr.msra.gmra.mrb[2].mxu1 %vm441_vm2, %v449_v38 }
 0x246   : > { %v539_v41 = vpop.permute.xlu1 %538 }
 0x2a8   : > { %v526_v42 = vpop.f32.mrb[2].mxu1 }
 0x2a9   : > { %v541_v43 = vsel %vm277_vm1, %v526_v42, %v539_v41  ;;  %v670_v44 = vpop.f32.mrb[3].mxu1 }
 0x2aa   : > { %v543_v45 = vsel %vm542_vm6, %v541_v43, 0.0 }
 0x2ab   : > { %544 = vst [vmem:[%s259_s21] sm:$0xff] %v543_v45 }
 0x2ac PF: > { %s15_s18 = sadd.s32 1, %s698_s18  }
 0x2ad   : > { %p12_p4 = scmp.ge.s32.totalorder %s15_s18, 4  }
 0x2af   :  { %14 = sbr.rel (!%p12_p4) target bundleno = 1 (0x1), region = 76 }

// kernel: _device_forward.3
= control target key start
LH: loop header
LB: loop body
LE: loop exit
PB: predicated region body
PF: predicated region fallthrough
CT: control target
= control target key end

     0   :  { %v548_v3 = vmov 0.0|0.0   ;;  %vm549_vm0 = vmmov 0   ;;  %v550_v6 = vmov 0.0   ;;  %s713_s0 = inlined_call_operand.vmem [shape: f32[8,8], index: 0, kind: input, shape index: {}]   ;;  %s714_s1 = inlined_call_operand.vmem [shape: f32[8,128], index: 1, kind: input, shape index: {}]   ;;  %s715_s2 = inlined_call_operand.vmem [shape: f32[128,128], index: 2, kind: input, shape index: {}]   ;;  %s716_s3 = inlined_call_operand.vmem [shape: f32[128,128], index: 3, kind: input, shape index: {}]   ;;  %s717_s4 = inlined_call_operand.hbm [shape: f32[8,128], index: 4, kind: output, shape index: {}]  }
   0x1   :  { %v20_v0 = vld [vmem:[%s715_s2] sm:$0xff]  ;;  %v21_v1 = vld [vmem:[%s715_s2 + $0x8] sm:$0xff]  ;;  %v22_v2 = vld [vmem:[%s715_s2 + $0x10] sm:$0xff]  ;;  %472 = vmatprep.subr.bf16.mxu0 %v548_v3  ;;  %424 = vmatprep.mubr.msk.f32.mxu0 %vm549_vm0, %v550_v6 }
   0x2   :  { %v473_v4 = vpack.c.bf16 %v21_v1, %v20_v0  ;;  %v23_v5 = vld [vmem:[%s715_s2 + $0x18] sm:$0xff]  ;;  %427 = vmatprep.subr.mxu1 %v550_v6  ;;  %429 = vmatprep.mubr.msk.f32.mxu1 %vm549_vm0, %v550_v6  ;;  %v24_v8 = vld [vmem:[%s715_s2 + $0x20] sm:$0xff]  ;;  %v25_v9 = vld [vmem:[%s715_s2 + $0x28] sm:$0xff] }
   0x3   :  { %v476_v7 = vpack.c.bf16 %v23_v5, %v22_v2 }
   0x4   :  { %474 = vmatpush3.bf16.msra.mxu0 %v473_v4 }
   0x5   :  { %475 = vmatprep.subr.bf16.mxu0 %v548_v3 }
   0x6   :  { %9 = vsyncpa [#allocation3], 0  ;;  %v479_v10 = vpack.c.bf16 %v25_v9, %v24_v8  ;;  %v26_v11 = vld [vmem:[%s715_s2 + $0x30] sm:$0xff]  ;;  %v27_v12 = vld [vmem:[%s715_s2 + $0x38] sm:$0xff]  ;;  %vm106_vm1 = vcmask 64512   ;;  %s551_s27 = smov [#allocation2]  }
   0x7   :  { %v482_v13 = vpack.c.bf16 %v27_v12, %v26_v11  ;;  %v28_v14 = vld [vmem:[%s715_s2 + $0x40] sm:$0xff]  ;;  %v29_v15 = vld [vmem:[%s715_s2 + $0x48] sm:$0xff]  ;;  %v30_v17 = vld [vmem:[%s715_s2 + $0x50] sm:$0xff] }
   0x8   :  { %477 = vmatpush3.bf16.msra.mxu0 %v476_v7  ;;  %v485_v16 = vpack.c.bf16 %v29_v15, %v28_v14  ;;  %v31_v18 = vld [vmem:[%s715_s2 + $0x58] sm:$0xff]  ;;  %v32_v20 = vld [vmem:[%s715_s2 + $0x60] sm:$0xff]  ;;  %v33_v21 = vld [vmem:[%s715_s2 + $0x68] sm:$0xff] }
   0x9   :  { %478 = vmatprep.subr.bf16.mxu0 %v548_v3  ;;  %v488_v19 = vpack.c.bf16 %v31_v18, %v30_v17  ;;  %v491_v22 = vpack.c.bf16 %v33_v21, %v32_v20  ;;  %v34_v23 = vld [vmem:[%s715_s2 + $0x70] sm:$0xff]  ;;  %v35_v24 = vld [vmem:[%s715_s2 + $0x78] sm:$0xff]  ;;  %v19_v26 = vld [vmem:[%s714_s1] sm:$0xff]  ;;  %s344_s1 = sshll.u32 %s551_s27, 4  ;;  %s345_s1 = int_to_ptr.vmem [resolvable:$true] %s344_s1 }
   0xa   :  { %v494_v25 = vpack.c.bf16 %v35_v24, %v34_v23  ;;  %v181_v27 = vld [vmem:[%s716_s3] sm:$0xff]  ;;  %v182_v28 = vld [vmem:[%s716_s3 + $0x8] sm:$0xff]  ;;  %v183_v32 = vld [vmem:[%s716_s3 + $0x10] sm:$0xff]  ;;  %s524_s28 = scalar_lea.vmem %s345_s1, 128  ;;  %p529_p1 = scmp.lt.s32.totalorder %s345_s1, %s345_s1 }
   0xb   :  { %v18_v29 = vld [vmem:[%s713_s0] sm:$0xff]  ;;  %v497_v30 = vpack.c.bf16 %v182_v28, %v181_v27  ;;  %v184_v33 = vld [vmem:[%s716_s3 + $0x18] sm:$0xff]  ;;  %v186_v37 = vld [vmem:[%s716_s3 + $0x28] sm:$0xff]  ;;  %p525_p0 = scmp.ne.s32.totalorder %s345_s1, %s524_s28  ;;  %p530_p2 = scmp.lt.s32.totalorder %s524_s28, %s524_s28 }
   0xc   :  { %480 = vmatpush3.bf16.msra.mxu0 %v479_v10  ;;  %v500_v35 = vpack.c.bf16 %v184_v33, %v183_v32  ;;  %v185_v36 = vld [vmem:[%s716_s3 + $0x20] sm:$0xff]  ;;  %v187_v39 = vld [vmem:[%s716_s3 + $0x30] sm:$0xff]  ;;  %v188_v40 = vld [vmem:[%s716_s3 + $0x38] sm:$0xff] }
   0xd   :  { %481 = vmatprep.subr.bf16.mxu0 %v548_v3  ;;  %v503_v38 = vpack.c.bf16 %v186_v37, %v185_v36  ;;  %v506_v41 = vpack.c.bf16 %v188_v40, %v187_v39  ;;  %v189_v42 = vld [vmem:[%s716_s3 + $0x40] sm:$0xff]  ;;  %v190_v43 = vld [vmem:[%s716_s3 + $0x48] sm:$0xff]  ;;  %v191_v45 = vld [vmem:[%s716_s3 + $0x50] sm:$0xff]  ;;  %p531_p3 = por %p530_p2, %p529_p1 }
   0xe   :  { %v509_v44 = vpack.c.bf16 %v190_v43, %v189_v42  ;;  %v192_v46 = vld [vmem:[%s716_s3 + $0x58] sm:$0xff]  ;;  %v193_v48 = vld [vmem:[%s716_s3 + $0x60] sm:$0xff]  ;;  %v194_v49 = vld [vmem:[%s716_s3 + $0x68] sm:$0xff] }
   0xf   :  { %v512_v47 = vpack.c.bf16 %v192_v46, %v191_v45  ;;  %v515_v50 = vpack.c.bf16 %v194_v49, %v193_v48  ;;  %v195_v51 = vld [vmem:[%s716_s3 + $0x70] sm:$0xff]  ;;  %v196_v52 = vld [vmem:[%s716_s3 + $0x78] sm:$0xff]  ;;  %p532_p4 = pnand %p531_p3, %p525_p0 }
  0x10   :  { %483 = vmatpush3.bf16.msra.mxu0 %v482_v13  ;;  %v518_v53 = vpack.c.bf16 %v196_v52, %v195_v51 }
  0x11   :  { %484 = vmatprep.subr.bf16.mxu0 %v548_v3 }
  0x14   :  { %486 = vmatpush3.bf16.msra.mxu0 %v485_v16 }
  0x15   :  { %487 = vmatprep.subr.bf16.mxu0 %v548_v3 }
  0x18   :  { %489 = vmatpush3.bf16.msra.mxu0 %v488_v19 }
  0x19   :  { %490 = vmatprep.subr.bf16.mxu0 %v548_v3 }
  0x1c   :  { %492 = vmatpush3.bf16.msra.mxu0 %v491_v22 }
  0x1d   :  { %493 = vmatprep.subr.bf16.mxu0 %v548_v3 }
  0x20   :  { %495 = vmatpush3.bf16.msra.mxu0 %v494_v25 }
  0x21   :  { %467 = vmatprep.subr.mxu0 %v550_v6 }
  0x23   :  { %425 = vmatmul.mubr.f32.vlgmr.msra.gmra.mrb[0].mxu0 %v19_v26 }
  0x24   :  { %469 = vmatprep.mubr.msk.f32.mxu0 %vm549_vm0, %v550_v6 }
  0xf6   :  { %v102_v31 = vpop.f32.mrb[0].mxu0 }
  0xf7   :  { %v426_v34 = vpop.f32.mrb[1].mxu0  ;;  %428 = vmatpush3.msra.mxu1 %v102_v31 }
  0xf8   :  { %430 = vmatmul.mubr.msk.f32.vlgmr.msra.gmra.mrb[0].mxu1 %vm106_vm1, %v18_v29  ;;  %496 = vmatprep.subr.bf16.mxu1 %v548_v3 }
  0xf9   :  { %498 = vmatpush3.bf16.msra.mxu1 %v497_v30  ;;  %464 = vmatprep.mubr.msk.f32.mxu1 %vm549_vm0, %v550_v6 }
  0xfa   :  { %499 = vmatprep.subr.bf16.mxu1 %v548_v3 }
  0xfd   :  { %501 = vmatpush3.bf16.msra.mxu1 %v500_v35 }
  0xfe   :  { %502 = vmatprep.subr.bf16.mxu1 %v548_v3 }
 0x101   :  { %504 = vmatpush3.bf16.msra.mxu1 %v503_v38 }
 0x102   :  { %505 = vmatprep.subr.bf16.mxu1 %v548_v3 }
 0x105   :  { %507 = vmatpush3.bf16.msra.mxu1 %v506_v41 }
 0x106   :  { %508 = vmatprep.subr.bf16.mxu1 %v548_v3 }
 0x109   :  { %510 = vmatpush3.bf16.msra.mxu1 %v509_v44 }
 0x10a   :  { %511 = vmatprep.subr.bf16.mxu1 %v548_v3 }
 0x10d   :  { %513 = vmatpush3.bf16.msra.mxu1 %v512_v47 }
 0x10e   :  { %514 = vmatprep.subr.bf16.mxu1 %v548_v3 }
 0x111   :  { %516 = vmatpush3.bf16.msra.mxu1 %v515_v50 }
 0x112   :  { %517 = vmatprep.subr.bf16.mxu1 %v548_v3 }
 0x115   :  { %519 = vmatpush3.bf16.msra.mxu1 %v518_v53 }
 0x1cb   :  { %v176_v54 = vpop.f32.mrb[0].mxu1 }
 0x1cc   :  { %v180_v55 = vmax.f32 %v176_v54, 0.0  ;;  %v431_v56 = vpop.f32.mrb[1].mxu1 }
 0x1ce   :  { %465 = vmatmul.mubr.f32.vlgmr.msra.gmra.mrb[2].mxu1 %v180_v55 }
 0x2a1   :  { %v263_v57 = vpop.f32.mrb[2].mxu1 }
 0x2a2   :  { %v466_v58 = vpop.f32.mrb[3].mxu1  ;;  %468 = vmatpush3.msra.mxu0 %v263_v57 }
 0x2a3   :  { %470 = vmatmul.mubr.msk.f32.vlgmr.msra.gmra.mrb[2].mxu0 %vm106_vm1, %v18_v29 }
 0x376   :  { %v333_v59 = vpop.f32.mrb[2].mxu0 }
 0x377   :  { %337 = vst [vmem:[#allocation2] sm:$0xff] %v333_v59  ;;  %v471_v60 = vpop.f32.mrb[3].mxu0 }
 0x378   :  { %535 = shalt.err (!%p532_p4)
}
 0x379   :  { %s536_s30 = scalar_lea.hbm %s717_s4, 128 }
 0x37a   :  { %p537_p5 = scmp.ne.s32.totalorder %s717_s4, %s536_s30  ;;  %p540_p6 = scmp.lt.u32.totalorder %s536_s30, %s717_s4 }
 0x37c   :  { %p542_p7 = pnand %p540_p6, %p537_p5 }
 0x37e   :  { %545 = shalt.err (!%p542_p7)
}
 0x37f   :  { %347 = dma.vmem_to_hbm [thread:$0]  %s345_s1, 128, %s717_s4, [#allocation3]  }
 0x380   :  { %546 = dma.done.wait [#allocation3], 128  }
 0x381   :  { %547 = vsyncadd [#allocation3], 4294967168 }
 0x382   :  { %351 = vsyncpa [#allocation3], 1 }

</bundles_post_ra>
